<compile_context>
chip_gen: v6e
topology: v6e:2x2x1
jax: 0.10.0
libtpu: 0.0.40
codegen_flags: <defaults>
</compile_context>

<pallas_src>
import functools

import jax
import jax.numpy as jnp
from jax.experimental import pallas as pl
from jax.experimental.pallas import tpu as pltpu


_LANE = 128
_HEADROOM = 6 * 1024 * 1024          # slack left for Mosaic internal scratch
_HAS_BUFFERED = hasattr(pl, "Buffered")


def _round_up(x, m):
    return ((x + m - 1) // m) * m


@functools.lru_cache(maxsize=1)
def _vmem_budget_bytes():
    """Generation-aware usable-VMEM budget (leaves headroom below physical)."""
    cap = 64 * 1024 * 1024            # conservative default = v7x per-TC VMEM
    try:
        info = pltpu.get_tpu_info()
        for attr in ("vmem_capacity_bytes", "vmem_size_bytes", "vmem_bytes"):
            v = getattr(info, attr, None)
            if v:
                cap = int(v)
                break
    except Exception:
        pass
    # 8 MiB headroom below physical; cap at ~110 MiB on 128 MiB parts.
    return int(min(cap - 8 * 1024 * 1024, 110 * 1024 * 1024))


def _padded_dim(n):
    """Padded graph size implied by the tile plan (depends only on N)."""
    tk = min(1024, _round_up(n, _LANE))
    tm = min(2048, _round_up(n, tk))
    return _round_up(n, tm)


def _non_e_vmem_bytes(tm, tk, dp, adj_item, emb_item):
    """VMEM footprint of everything except the E operand (double-buffered)."""
    return (2 * tm * tk * adj_item        # adj tiles
            + 2 * tm * dp * 4             # acc_in tiles
            + 2 * tm * dp * emb_item      # emb_out tiles
            + 2 * tm * dp * 4             # acc_out tiles
            + tm * dp * 4                 # f32 scratch accumulator
            + 2 * tm * 4)                 # row-scale tiles (int8 path)


def _select_tiles(n, dp, adj_item, emb_item, budget):
    """Large-tile plan: tk<=1024, tm<=2048, shrunk only if VMEM demands it."""
    tk = min(1024, _round_up(n, _LANE))
    tm = min(2048, _round_up(n, tk))
    np_ = _round_up(n, tm)
    while tm > 256 and (_non_e_vmem_bytes(tm, tk, dp, adj_item, emb_item)
                        + _HEADROOM > budget):
        tm //= 2                           # halving keeps Np % tm == 0
    # keep >=2 row blocks so the "parallel" axis can shard across TensorCores
    if np_ // tm < 2 and np_ // 2 >= 128:
        tm = np_ // 2
    return tm, tk, np_


def _resident_emb_spec(np_, dp):
    """Full-array, constant-index E spec; single-buffered when supported."""
    idx = lambda i, k: (0, 0)
    if _HAS_BUFFERED:
        try:
            return pl.BlockSpec((np_, dp), idx,
                                pipeline_mode=pl.Buffered(buffer_count=1))
        except TypeError:
            pass
    return pl.BlockSpec((np_, dp), idx)


def _hop_kernel(*refs, emb_resident, out_scale, has_row_scale):
    """One row-tile of a LightGCN hop.

    scratch(f32) accumulates adj_tile @ emb_block over k; on the last k step we
    emit the new embedding tile (optionally row-rescaled for int8 adjacency)
    and acc_out = (acc_in + new_emb) * out_scale.
    """
    if has_row_scale:
        (adj_ref, emb_ref, acc_in_ref, scale_ref,
         emb_out_ref, acc_out_ref, scratch) = refs
    else:
        (adj_ref, emb_ref, acc_in_ref,
         emb_out_ref, acc_out_ref, scratch) = refs
        scale_ref = None

    k = pl.program_id(1)

    if emb_resident:
        # E fully resident in VMEM; slice out the k-th row block.
        tk = adj_ref.shape[1]
        e_blk = emb_ref[pl.ds(pl.multiple_of(k * tk, tk), tk), :]
    else:
        e_blk = emb_ref[...]

    a_blk = adj_ref[...]
    if a_blk.dtype != e_blk.dtype:
        # narrow-storage adjacency (int8 / fp8 / f32) -> MXU operand dtype
        a_blk = a_blk.astype(e_blk.dtype)

    part = jnp.dot(a_blk, e_blk, preferred_element_type=jnp.float32)

    @pl.when(k == 0)
    def _():
        scratch[...] = part          # no zero-fill + add on the first k step

    @pl.when(k > 0)
    def _():
        scratch[...] += part

    @pl.when(k == pl.num_programs(1) - 1)
    def _():
        new_emb = scratch[...]
        if scale_ref is not None:
            new_emb = new_emb * scale_ref[...]       # fold int8 row dequant
        emb_out_ref[...] = new_emb.astype(emb_out_ref.dtype)
        acc_new = acc_in_ref[...] + new_emb
        if out_scale != 1.0:
            acc_new = acc_new * jnp.float32(out_scale)   # fold 1/(hop+1)
        acc_out_ref[...] = acc_new


def _lightgcn_hop(adj, emb, acc, row_scale, *, tm, tk, emb_resident,
                  out_scale, vmem_limit):
    """(A @ emb, (acc + A @ emb) * out_scale).  adj/emb narrow, acc f32."""
    np_ = adj.shape[0]
    dp = emb.shape[1]
    grid = (np_ // tm, np_ // tk)

    adj_item = jnp.dtype(adj.dtype).itemsize
    emb_item = jnp.dtype(emb.dtype).itemsize

    in_specs = [pl.BlockSpec((tm, tk), lambda i, k: (i, k))]     # adj tile
    if emb_resident:
        in_specs.append(_resident_emb_spec(np_, dp))             # E fetched once
        e_hbm_reads = 1
    else:
        in_specs.append(pl.BlockSpec((tk, dp), lambda i, k: (k, 0)))  # streamed
        e_hbm_reads = np_ // tm
    in_specs.append(pl.BlockSpec((tm, dp), lambda i, k: (i, 0)))      # acc_in

    operands = [adj, emb, acc]
    if row_scale is not None:
        in_specs.append(pl.BlockSpec((tm, 1), lambda i, k: (i, 0)))   # row scale
        operands.append(row_scale)

    cost = pl.CostEstimate(
        flops=2 * np_ * np_ * dp,
        transcendentals=0,
        bytes_accessed=(np_ * np_ * adj_item
                        + e_hbm_reads * np_ * dp * emb_item
                        + np_ * dp * emb_item          # emb_out
                        + 2 * np_ * dp * 4),           # acc in + out
    )

    kernel = functools.partial(_hop_kernel,
                               emb_resident=emb_resident,
                               out_scale=out_scale,
                               has_row_scale=row_scale is not None)

    return pl.pallas_call(
        kernel,
        out_shape=(
            jax.ShapeDtypeStruct((np_, dp), emb.dtype),   # new embedding
            jax.ShapeDtypeStruct((np_, dp), acc.dtype),   # running hop-sum
        ),
        grid_spec=pltpu.PrefetchScalarGridSpec(
            num_scalar_prefetch=0,
            grid=grid,
            in_specs=in_specs,
            out_specs=[pl.BlockSpec((tm, dp), lambda i, k: (i, 0)),
                       pl.BlockSpec((tm, dp), lambda i, k: (i, 0))],
            scratch_shapes=[pltpu.VMEM((tm, dp), jnp.float32)],
        ),
        input_output_aliases={2: 1},          # update the hop-sum in place
        compiler_params=pltpu.CompilerParams(
            dimension_semantics=("parallel", "arbitrary"),
            vmem_limit_bytes=int(vmem_limit)),
        cost_estimate=cost,
    )(*operands)


@functools.partial(jax.jit, static_argnames=("compute_dtype", "quantize_int8"))
def prepare_adjacency(adj, *, compute_dtype=jnp.bfloat16, quantize_int8=False):
    """Cast / pad (and optionally int8 row-quantize) the adjacency ONCE.

    The returned (adj_prepared, row_scale) can be passed to lightgcn_s_forward
    on every step, amortising the cast+pad HBM pass across calls.  With
    quantize_int8=True the adjacency is stored as int8 with per-row f32 scales
    (adj ~= diag(scale) @ adj_int8), halving HBM traffic vs bf16.
    """
    n = adj.shape[0]
    np_ = _padded_dim(n)
    if quantize_int8:
        absmax = jnp.max(jnp.abs(adj), axis=1, keepdims=True)
        scale = jnp.maximum(absmax, 1e-30) / 127.0
        adj_q = jnp.clip(jnp.round(adj / scale), -127, 127).astype(jnp.int8)
        if np_ != n:
            adj_q = jnp.pad(adj_q, ((0, np_ - n), (0, np_ - n)))
            scale = jnp.pad(scale, ((0, np_ - n), (0, 0)))
        return adj_q, scale.astype(jnp.float32)
    adj_c = adj.astype(compute_dtype)
    if np_ != n:
        adj_c = jnp.pad(adj_c, ((0, np_ - n), (0, np_ - n)))
    return adj_c, None


@functools.partial(jax.jit,
                   static_argnames=("hop", "compute_dtype", "force_streaming"))
def lightgcn_s_forward(users_emb, adj, hop, adj_row_scale=None, *,
                       compute_dtype=jnp.bfloat16, force_streaming=False):
    """Pallas implementation of LightGCN_s.forward(users_emb, adj).

    adj may be the raw (N,N) float adjacency, or a pre-prepared (padded,
    narrow-dtype, optionally int8 + adj_row_scale) matrix from
    prepare_adjacency().  compute_dtype sets the MXU operand dtype (f32 for an
    exact run); accumulation is always f32.
    """
    # TODO(synk): torch.sparse.mm branch (sparse adj) has no sparse Pallas
    # equivalent; the dense-matmul branch is implemented (same result).
    n, d = users_emb.shape
    out_dtype = users_emb.dtype
    if hop == 0:
        return users_emb

    emb_item = jnp.dtype(compute_dtype).itemsize
    budget = _vmem_budget_bytes()
    np_ = _padded_dim(n)
    dp = _round_up(d, _LANE)

    # --- adjacency: reuse pre-prepared matrices as-is, else cast+pad here ----
    if adj.shape != (np_, np_):
        adj = adj.astype(compute_dtype)
        if np_ != n:
            adj = jnp.pad(adj, ((0, np_ - n), (0, np_ - n)))
    adj_item = jnp.dtype(adj.dtype).itemsize

    if jnp.issubdtype(adj.dtype, jnp.integer) and adj_row_scale is None:
        raise ValueError("int-quantized adjacency requires adj_row_scale")

    row_scale = None
    if adj_row_scale is not None:
        row_scale = adj_row_scale.astype(jnp.float32).reshape(-1, 1)
        if row_scale.shape[0] != np_:
            row_scale = jnp.pad(row_scale,
                                ((0, np_ - row_scale.shape[0]), (0, 0)))

    # --- tile plan + residency decision (generation-aware VMEM budget) -------
    tm, tk, np_chk = _select_tiles(n, dp, adj_item, emb_item, budget)
    assert np_chk == np_
    non_e = _non_e_vmem_bytes(tm, tk, dp, adj_item, emb_item)
    e_resident_bytes = np_ * dp * emb_item * (1 if _HAS_BUFFERED else 2)
    emb_resident = ((not force_streaming)
                    and non_e + e_resident_bytes + _HEADROOM <= budget)

    # --- pad embeddings (zeros do not change the result) ----------------------
    emb = users_emb.astype(compute_dtype)
    acc = users_emb.astype(jnp.float32)          # hop-0 term, f32 running sum
    if (np_, dp) != (n, d):
        emb = jnp.pad(emb, ((0, np_ - n), (0, dp - d)))
        acc = jnp.pad(acc, ((0, np_ - n), (0, dp - d)))

    inv = 1.0 / float(hop + 1)
    for h in range(hop):
        out_scale = inv if h == hop - 1 else 1.0
        emb, acc = _lightgcn_hop(adj, emb, acc, row_scale,
                                 tm=tm, tk=tk, emb_resident=emb_resident,
                                 out_scale=out_scale, vmem_limit=budget)

    return acc[:n, :d].astype(out_dtype)


def lightgcn_s_reference(users_emb, adj, hop):
    """Pure-JAX reference mirroring the PyTorch module exactly."""
    embs = [users_emb]
    emb = users_emb
    for _ in range(hop):
        emb = jnp.matmul(adj, emb)
        embs.append(emb)
    return jnp.mean(jnp.stack(embs, axis=1), axis=1)


if __name__ == "__main__":
    # Small, deliberately non-tile-aligned shapes to exercise the padding path.
    N, D = 200, 96
    HOP = 3

    key = jax.random.PRNGKey(0)
    k_emb, k_adj = jax.random.split(key)

    users_emb = jax.random.normal(k_emb, (N, D), dtype=jnp.float32)
    # Deterministic synthetic dense, row-normalized adjacency-like matrix.
    adj_raw = jax.random.uniform(k_adj, (N, N), dtype=jnp.float32)
    adj = adj_raw / jnp.sum(adj_raw, axis=1, keepdims=True)

    ref = lightgcn_s_reference(users_emb, adj, HOP)

    # 1) Exact path (f32 MXU operands), raw adjacency cast/padded in-call.
    out_f32 = jax.block_until_ready(
        lightgcn_s_forward(users_emb, adj, HOP, compute_dtype=jnp.float32))
    assert out_f32.shape == (N, D)
    assert jnp.allclose(out_f32, ref, rtol=1e-4, atol=1e-4), "f32 path mismatch"

    # 2) Fast path: bf16 adjacency prepared ONCE and reused (amortised cast/pad).
    adj_bf16, _ = prepare_adjacency(adj, compute_dtype=jnp.bfloat16)
    out_bf16 = jax.block_until_ready(
        lightgcn_s_forward(users_emb, adj_bf16, HOP))
    assert out_bf16.shape == (N, D)
    assert jnp.allclose(out_bf16, ref, rtol=2e-2, atol=2e-2), "bf16 path mismatch"

    # 3) int8 row-quantized adjacency (half the dominant HBM stream vs bf16).
    adj_i8, row_scale = prepare_adjacency(adj, quantize_int8=True)
    out_i8 = jax.block_until_ready(
        lightgcn_s_forward(users_emb, adj_i8, HOP, adj_row_scale=row_scale))
    assert out_i8.shape == (N, D)
    assert jnp.allclose(out_i8, ref, rtol=5e-2, atol=5e-2), "int8 path mismatch"

    # 4) Streaming-E fallback (large-graph code path), forced at this shape.
    out_stream = jax.block_until_ready(
        lightgcn_s_forward(users_emb, adj_bf16, HOP, force_streaming=True))
    assert jnp.allclose(out_stream, out_bf16, rtol=1e-6, atol=1e-6), \
        "streaming path mismatch"

    print("KERNEL_OK")
</pallas_src>

<mosaic_0001>
module attributes {stable_mosaic.version = 11 : i64} {
  func.func @_hop_kernel(%arg0: i32, %arg1: i32, %arg2: memref<128x256xf32, #tpu.memory_space<vmem>>, %arg3: memref<256x128xf32, #tpu.memory_space<vmem>>, %arg4: memref<128x128xf32, #tpu.memory_space<vmem>>, %arg5: memref<128x128xf32, #tpu.memory_space<vmem>>, %arg6: memref<128x128xf32, #tpu.memory_space<vmem>>, %arg7: memref<128x128xf32, #tpu.memory_space<vmem>>) attributes {dimension_semantics = [#tpu.dimension_semantics<parallel>, #tpu.dimension_semantics<arbitrary>], iteration_bounds = array<i64: 2, 1>, scalar_prefetch = 0 : i64, scratch_operands = 1 : i64, tpu.core_type = #tpu.core_type<tc>, window_params = [{transform_indices = @transform_0, window_bounds = array<i64: 128, 256>}, {pipeline_mode = #tpu.pipeline_mode<synchronous>, transform_indices = @transform_1, window_bounds = array<i64: 256, 128>}, {transform_indices = @transform_2, window_bounds = array<i64: 128, 128>}, {transform_indices = @transform_3, window_bounds = array<i64: 128, 128>}, {transform_indices = @transform_4, window_bounds = array<i64: 128, 128>}]} {
    %c256_i32 = arith.constant 256 : i32
    %0 = arith.muli %arg1, %c256_i32 : i32
    %1 = tpu.assume_multiple %0, 256 : i32
    %2 = arith.index_cast %1 : i32 to index
    %c0 = arith.constant 0 : index
    %3 = vector.load %arg3[%2, %c0] : memref<256x128xf32, #tpu.memory_space<vmem>>, vector<256x128xf32>
    %c0_0 = arith.constant 0 : index
    %c0_1 = arith.constant 0 : index
    %4 = vector.load %arg2[%c0_0, %c0_1] : memref<128x256xf32, #tpu.memory_space<vmem>>, vector<128x256xf32>
    %cst = arith.constant dense<0.000000e+00> : vector<128x128xf32>
    %5 = tpu.matmul %4, %3, %cst {dimension_numbers = #tpu.dot_dimension_numbers<[1], [0], [0], [1], [0, 0, 1, 1], [], []>} : vector<128x256xf32>, vector<256x128xf32>, vector<128x128xf32> -> vector<128x128xf32>
    %c0_i32 = arith.constant 0 : i32
    %6 = arith.cmpi eq, %arg1, %c0_i32 : i32
    %7 = arith.extui %6 : i1 to i32
    %c0_i32_2 = arith.constant 0 : i32
    %8 = arith.cmpi ne, %7, %c0_i32_2 : i32
    scf.if %8 {
      %c0_7 = arith.constant 0 : index
      %c0_8 = arith.constant 0 : index
      %15 = vector.load %arg7[%c0_7, %c0_8] : memref<128x128xf32, #tpu.memory_space<vmem>>, vector<128x128xf32>
      tpu.vector_store %arg7[%c0_7, %c0_8], %5 {strides = array<i32>} : memref<128x128xf32, #tpu.memory_space<vmem>>, vector<128x128xf32>,
    } else {
    }
    %c0_i32_3 = arith.constant 0 : i32
    %9 = arith.cmpi sgt, %arg1, %c0_i32_3 : i32
    %10 = arith.extui %9 : i1 to i32
    %c0_i32_4 = arith.constant 0 : i32
    %11 = arith.cmpi ne, %10, %c0_i32_4 : i32
    scf.if %11 {
      %c0_7 = arith.constant 0 : index
      %c0_8 = arith.constant 0 : index
      %15 = vector.load %arg7[%c0_7, %c0_8] : memref<128x128xf32, #tpu.memory_space<vmem>>, vector<128x128xf32>
      %16 = arith.addf %15, %5 : vector<128x128xf32>
      %c0_9 = arith.constant 0 : index
      %c0_10 = arith.constant 0 : index
      %17 = vector.load %arg7[%c0_9, %c0_10] : memref<128x128xf32, #tpu.memory_space<vmem>>, vector<128x128xf32>
      tpu.vector_store %arg7[%c0_9, %c0_10], %16 {strides = array<i32>} : memref<128x128xf32, #tpu.memory_space<vmem>>, vector<128x128xf32>,
    } else {
    }
    %c0_i32_5 = arith.constant 0 : i32
    %12 = arith.cmpi eq, %arg1, %c0_i32_5 : i32
    %13 = arith.extui %12 : i1 to i32
    %c0_i32_6 = arith.constant 0 : i32
    %14 = arith.cmpi ne, %13, %c0_i32_6 : i32
    scf.if %14 {
      %c0_7 = arith.constant 0 : index
      %c0_8 = arith.constant 0 : index
      %15 = vector.load %arg7[%c0_7, %c0_8] : memref<128x128xf32, #tpu.memory_space<vmem>>, vector<128x128xf32>
      %c0_9 = arith.constant 0 : index
      %c0_10 = arith.constant 0 : index
      %16 = vector.load %arg5[%c0_9, %c0_10] : memref<128x128xf32, #tpu.memory_space<vmem>>, vector<128x128xf32>
      tpu.vector_store %arg5[%c0_9, %c0_10], %15 {strides = array<i32>} : memref<128x128xf32, #tpu.memory_space<vmem>>, vector<128x128xf32>,
      %c0_11 = arith.constant 0 : index
      %c0_12 = arith.constant 0 : index
      %17 = vector.load %arg4[%c0_11, %c0_12] : memref<128x128xf32, #tpu.memory_space<vmem>>, vector<128x128xf32>
      %18 = arith.addf %17, %15 : vector<128x128xf32>
      %cst_13 = arith.constant 2.500000e-01 : f32
      %19 = vector.broadcast %cst_13 : f32 to vector<128x128xf32>
      %20 = arith.mulf %18, %19 : vector<128x128xf32>
      %c0_14 = arith.constant 0 : index
      %c0_15 = arith.constant 0 : index
      %21 = vector.load %arg6[%c0_14, %c0_15] : memref<128x128xf32, #tpu.memory_space<vmem>>, vector<128x128xf32>
      tpu.vector_store %arg6[%c0_14, %c0_15], %20 {strides = array<i32>} : memref<128x128xf32, #tpu.memory_space<vmem>>, vector<128x128xf32>,
    } else {
    }
    return
  }
  func.func @transform_0(%arg0: i32, %arg1: i32) -> (i32, i32) {
    %c0_i32 = arith.constant 0 : i32
    return %arg0, %arg1 : i32, i32
  }
  func.func @transform_1(%arg0: i32, %arg1: i32) -> (i32, i32) {
    %c0_i32 = arith.constant 0 : i32
    %c0_i32_0 = arith.constant 0 : i32
    %c0_i32_1 = arith.constant 0 : i32
    return %c0_i32, %c0_i32_0 : i32, i32
  }
  func.func @transform_2(%arg0: i32, %arg1: i32) -> (i32, i32) {
    %c0_i32 = arith.constant 0 : i32
    %c0_i32_0 = arith.constant 0 : i32
    return %arg0, %c0_i32 : i32, i32
  }
  func.func @transform_3(%arg0: i32, %arg1: i32) -> (i32, i32) {
    %c0_i32 = arith.constant 0 : i32
    %c0_i32_0 = arith.constant 0 : i32
    return %arg0, %c0_i32 : i32, i32
  }
  func.func @transform_4(%arg0: i32, %arg1: i32) -> (i32, i32) {
    %c0_i32 = arith.constant 0 : i32
    %c0_i32_0 = arith.constant 0 : i32
    return %arg0, %c0_i32 : i32, i32
  }
}

module attributes {stable_mosaic.version = 11 : i64} {
  func.func @_hop_kernel(%arg0: i32, %arg1: i32, %arg2: memref<128x256xf32, #tpu.memory_space<vmem>>, %arg3: memref<256x128xf32, #tpu.memory_space<vmem>>, %arg4: memref<128x128xf32, #tpu.memory_space<vmem>>, %arg5: memref<128x128xf32, #tpu.memory_space<vmem>>, %arg6: memref<128x128xf32, #tpu.memory_space<vmem>>, %arg7: memref<128x128xf32, #tpu.memory_space<vmem>>) attributes {dimension_semantics = [#tpu.dimension_semantics<parallel>, #tpu.dimension_semantics<arbitrary>], iteration_bounds = array<i64: 2, 1>, scalar_prefetch = 0 : i64, scratch_operands = 1 : i64, tpu.core_type = #tpu.core_type<tc>, window_params = [{transform_indices = @transform_0, window_bounds = array<i64: 128, 256>}, {pipeline_mode = #tpu.pipeline_mode<synchronous>, transform_indices = @transform_1, window_bounds = array<i64: 256, 128>}, {transform_indices = @transform_2, window_bounds = array<i64: 128, 128>}, {transform_indices = @transform_3, window_bounds = array<i64: 128, 128>}, {transform_indices = @transform_4, window_bounds = array<i64: 128, 128>}]} {
    %c256_i32 = arith.constant 256 : i32
    %0 = arith.muli %arg1, %c256_i32 : i32
    %1 = tpu.assume_multiple %0, 256 : i32
    %2 = arith.index_cast %1 : i32 to index
    %c0 = arith.constant 0 : index
    %3 = vector.load %arg3[%2, %c0] : memref<256x128xf32, #tpu.memory_space<vmem>>, vector<256x128xf32>
    %c0_0 = arith.constant 0 : index
    %c0_1 = arith.constant 0 : index
    %4 = vector.load %arg2[%c0_0, %c0_1] : memref<128x256xf32, #tpu.memory_space<vmem>>, vector<128x256xf32>
    %cst = arith.constant dense<0.000000e+00> : vector<128x128xf32>
    %5 = tpu.matmul %4, %3, %cst {dimension_numbers = #tpu.dot_dimension_numbers<[1], [0], [0], [1], [0, 0, 1, 1], [], []>} : vector<128x256xf32>, vector<256x128xf32>, vector<128x128xf32> -> vector<128x128xf32>
    %c0_i32 = arith.constant 0 : i32
    %6 = arith.cmpi eq, %arg1, %c0_i32 : i32
    %7 = arith.extui %6 : i1 to i32
    %c0_i32_2 = arith.constant 0 : i32
    %8 = arith.cmpi ne, %7, %c0_i32_2 : i32
    scf.if %8 {
      %c0_7 = arith.constant 0 : index
      %c0_8 = arith.constant 0 : index
      %15 = vector.load %arg7[%c0_7, %c0_8] : memref<128x128xf32, #tpu.memory_space<vmem>>, vector<128x128xf32>
      tpu.vector_store %arg7[%c0_7, %c0_8], %5 {strides = array<i32>} : memref<128x128xf32, #tpu.memory_space<vmem>>, vector<128x128xf32>,
    } else {
    }
    %c0_i32_3 = arith.constant 0 : i32
    %9 = arith.cmpi sgt, %arg1, %c0_i32_3 : i32
    %10 = arith.extui %9 : i1 to i32
    %c0_i32_4 = arith.constant 0 : i32
    %11 = arith.cmpi ne, %10, %c0_i32_4 : i32
    scf.if %11 {
      %c0_7 = arith.constant 0 : index
      %c0_8 = arith.constant 0 : index
      %15 = vector.load %arg7[%c0_7, %c0_8] : memref<128x128xf32, #tpu.memory_space<vmem>>, vector<128x128xf32>
      %16 = arith.addf %15, %5 : vector<128x128xf32>
      %c0_9 = arith.constant 0 : index
      %c0_10 = arith.constant 0 : index
      %17 = vector.load %arg7[%c0_9, %c0_10] : memref<128x128xf32, #tpu.memory_space<vmem>>, vector<128x128xf32>
      tpu.vector_store %arg7[%c0_9, %c0_10], %16 {strides = array<i32>} : memref<128x128xf32, #tpu.memory_space<vmem>>, vector<128x128xf32>,
    } else {
    }
    %c0_i32_5 = arith.constant 0 : i32
    %12 = arith.cmpi eq, %arg1, %c0_i32_5 : i32
    %13 = arith.extui %12 : i1 to i32
    %c0_i32_6 = arith.constant 0 : i32
    %14 = arith.cmpi ne, %13, %c0_i32_6 : i32
    scf.if %14 {
      %c0_7 = arith.constant 0 : index
      %c0_8 = arith.constant 0 : index
      %15 = vector.load %arg7[%c0_7, %c0_8] : memref<128x128xf32, #tpu.memory_space<vmem>>, vector<128x128xf32>
      %c0_9 = arith.constant 0 : index
      %c0_10 = arith.constant 0 : index
      %16 = vector.load %arg5[%c0_9, %c0_10] : memref<128x128xf32, #tpu.memory_space<vmem>>, vector<128x128xf32>
      tpu.vector_store %arg5[%c0_9, %c0_10], %15 {strides = array<i32>} : memref<128x128xf32, #tpu.memory_space<vmem>>, vector<128x128xf32>,
      %c0_11 = arith.constant 0 : index
      %c0_12 = arith.constant 0 : index
      %17 = vector.load %arg4[%c0_11, %c0_12] : memref<128x128xf32, #tpu.memory_space<vmem>>, vector<128x128xf32>
      %18 = arith.addf %17, %15 : vector<128x128xf32>
      %c0_13 = arith.constant 0 : index
      %c0_14 = arith.constant 0 : index
      %19 = vector.load %arg6[%c0_13, %c0_14] : memref<128x128xf32, #tpu.memory_space<vmem>>, vector<128x128xf32>
      tpu.vector_store %arg6[%c0_13, %c0_14], %18 {strides = array<i32>} : memref<128x128xf32, #tpu.memory_space<vmem>>, vector<128x128xf32>,
    } else {
    }
    return
  }
  func.func @transform_0(%arg0: i32, %arg1: i32) -> (i32, i32) {
    %c0_i32 = arith.constant 0 : i32
    return %arg0, %arg1 : i32, i32
  }
  func.func @transform_1(%arg0: i32, %arg1: i32) -> (i32, i32) {
    %c0_i32 = arith.constant 0 : i32
    %c0_i32_0 = arith.constant 0 : i32
    %c0_i32_1 = arith.constant 0 : i32
    return %c0_i32, %c0_i32_0 : i32, i32
  }
  func.func @transform_2(%arg0: i32, %arg1: i32) -> (i32, i32) {
    %c0_i32 = arith.constant 0 : i32
    %c0_i32_0 = arith.constant 0 : i32
    return %arg0, %c0_i32 : i32, i32
  }
  func.func @transform_3(%arg0: i32, %arg1: i32) -> (i32, i32) {
    %c0_i32 = arith.constant 0 : i32
    %c0_i32_0 = arith.constant 0 : i32
    return %arg0, %c0_i32 : i32, i32
  }
  func.func @transform_4(%arg0: i32, %arg1: i32) -> (i32, i32) {
    %c0_i32 = arith.constant 0 : i32
    %c0_i32_0 = arith.constant 0 : i32
    return %arg0, %c0_i32 : i32, i32
  }
}

</mosaic_0001>

<bundles_post_ra>
// kernel: lightgcn_s_forward.3
= control target key start
LH: loop header
LB: loop body
LE: loop exit
PB: predicated region body
PF: predicated region fallthrough
CT: control target
= control target key end

     0   :  { %s955_s15 = smov 0   ;;  %s957_s16 = smov 0   ;;  %s1188_s0 = inlined_call_operand.vmem [shape: f32[256,256], index: 0, kind: input, shape index: {}]   ;;  %s1189_s1 = inlined_call_operand.vmem [shape: f32[256,128], index: 1, kind: input, shape index: {}]   ;;  %s1190_s2 = inlined_call_operand.vmem [shape: f32[256,128], index: 2, kind: input, shape index: {}, may-alias: {2,4}]   ;;  %s1191_s3 = inlined_call_operand.vmem [shape: f32[256,128], index: 3, kind: output, shape index: {0}]   ;;  %s1192_s4 = inlined_call_operand.vmem [shape: f32[256,128], index: 4, kind: output, shape index: {1}, may-alias: {2,4}]  }
   0x1   :  { %s959_s17 = smov 0  }
   0x2 LB: > { %s27_s18 = sadd.s32 1, %s924_s16  ;;  %p757_p0 = scmp.ge.s32.totalorder %s928_s17, 1  ;;  %s928_s17 = sphi %s959_s17, %s15_s17   ;;  %s924_s16 = sphi %s957_s16, %s1194_s16   ;;  %s920_s15 = sphi %s955_s15, %s1193_s15  }
   0x3   : > { %p29_p1 = scmp.ge.s32.totalorder %s27_s18, 2  ;;  %p197_p2 = scmp.lt.s32.totalorder %s928_s17, 3 }
   0x5   : > { %s1196_s18 = smov (%p29_p1, %s27_s18), 0  ;;  %p198_p3 = pnand %p757_p0, %p197_p2 }
   0x6   : > { %s758_s29 = sshll.u32 (!%p198_p3), %s920_s15, 4 }
   0x7   : > { %201 = sbr.rel (%p198_p3) target bundleno = 274 (0x112), region = 32  ;;  %p240_p4 = scmp.lt.s32.totalorder (!%p198_p3), %s758_s29, 31 }
   0xc   : > { %v301_v0 = vld [vmem:[%s1189_s1 + $0xf8] sm:$0xff]  ;;  %v300_v2 = vld [vmem:[%s1189_s1 + $0xf0] sm:$0xff]  ;;  %v299_v4 = vld [vmem:[%s1189_s1 + $0xe8] sm:$0xff]  ;;  %s1198_s29 = smov (!%p240_p4, %s758_s29), 31 }
   0xd   : > { %v285_v1 = vld [vmem:[%s1189_s1 + $0x78] sm:$0xff]  ;;  %770 = vmatprep.subr.mxu0 %v301_v0  ;;  %850 = vmatprep.subr.mxu1 %v301_v0  ;;  %v284_v3 = vld [vmem:[%s1189_s1 + $0x70] sm:$0xff]  ;;  %v283_v5 = vld [vmem:[%s1189_s1 + $0x68] sm:$0xff]  ;;  %s769_s30 = sshll.u32 %s1198_s29, 4  ;;  %s762_s21 = sshll.u32 %s1198_s29, 3 }
   0xe   : > { %771 = vmatpush3.msra.mxu0 %v285_v1  ;;  %866 = vmatpush3.msra.mxu1 %v285_v1  ;;  %v298_v6 = vld [vmem:[%s1189_s1 + $0xe0] sm:$0xff]  ;;  %v297_v8 = vld [vmem:[%s1189_s1 + $0xd8] sm:$0xff]  ;;  %v296_v10 = vld [vmem:[%s1189_s1 + $0xd0] sm:$0xff]  ;;  %s1072_s12 = scalar_lea.vmem %s1188_s0, %s769_s30  ;;  %s254_s24 = scalar_lea.vmem %s1190_s2, %s762_s21 }
   0xf   : > { %772 = vmatprep.subr.mxu0 %v300_v2  ;;  %851 = vmatprep.subr.mxu1 %v300_v2  ;;  %v282_v7 = vld [vmem:[%s1189_s1 + $0x60] sm:$0xff]  ;;  %v281_v9 = vld [vmem:[%s1189_s1 + $0x58] sm:$0xff]  ;;  %v280_v11 = vld [vmem:[%s1189_s1 + $0x50] sm:$0xff]  ;;  %s1119_s27 = scalar_lea.vmem %s1191_s3, %s762_s21  ;;  %s1132_s30 = scalar_lea.vmem %s1192_s4, %s762_s21 }
  0x10   : > { %773 = vmatpush3.msra.mxu0 %v284_v3  ;;  %867 = vmatpush3.msra.mxu1 %v284_v3  ;;  %v295_v12 = vld [vmem:[%s1189_s1 + $0xc8] sm:$0xff]  ;;  %v294_v14 = vld [vmem:[%s1189_s1 + $0xc0] sm:$0xff]  ;;  %v293_v16 = vld [vmem:[%s1189_s1 + $0xb8] sm:$0xff] }
  0x11   : > { %774 = vmatprep.subr.mxu0 %v299_v4  ;;  %852 = vmatprep.subr.mxu1 %v299_v4  ;;  %v279_v13 = vld [vmem:[%s1189_s1 + $0x48] sm:$0xff]  ;;  %v278_v15 = vld [vmem:[%s1189_s1 + $0x40] sm:$0xff]  ;;  %v277_v17 = vld [vmem:[%s1189_s1 + $0x38] sm:$0xff] }
  0x12   : > { %775 = vmatpush3.msra.mxu0 %v283_v5  ;;  %868 = vmatpush3.msra.mxu1 %v283_v5  ;;  %v292_v18 = vld [vmem:[%s1189_s1 + $0xb0] sm:$0xff]  ;;  %v291_v20 = vld [vmem:[%s1189_s1 + $0xa8] sm:$0xff]  ;;  %v290_v22 = vld [vmem:[%s1189_s1 + $0xa0] sm:$0xff] }
  0x13   : > { %776 = vmatprep.subr.mxu0 %v298_v6  ;;  %853 = vmatprep.subr.mxu1 %v298_v6  ;;  %v276_v19 = vld [vmem:[%s1189_s1 + $0x30] sm:$0xff]  ;;  %v275_v21 = vld [vmem:[%s1189_s1 + $0x28] sm:$0xff]  ;;  %v274_v23 = vld [vmem:[%s1189_s1 + $0x20] sm:$0xff] }
  0x14   : > { %777 = vmatpush3.msra.mxu0 %v282_v7  ;;  %869 = vmatpush3.msra.mxu1 %v282_v7  ;;  %v289_v24 = vld [vmem:[%s1189_s1 + $0x98] sm:$0xff]  ;;  %v288_v26 = vld [vmem:[%s1189_s1 + $0x90] sm:$0xff]  ;;  %v287_v28 = vld [vmem:[%s1189_s1 + $0x88] sm:$0xff] }
  0x15   : > { %778 = vmatprep.subr.mxu0 %v297_v8  ;;  %854 = vmatprep.subr.mxu1 %v297_v8  ;;  %v273_v25 = vld [vmem:[%s1189_s1 + $0x18] sm:$0xff]  ;;  %v272_v27 = vld [vmem:[%s1189_s1 + $0x10] sm:$0xff]  ;;  %v271_v29 = vld [vmem:[%s1189_s1 + $0x8] sm:$0xff] }
  0x16   : > { %779 = vmatpush3.msra.mxu0 %v281_v9  ;;  %870 = vmatpush3.msra.mxu1 %v281_v9  ;;  %v286_v30 = vld [vmem:[%s1189_s1 + $0x80] sm:$0xff]  ;;  %v303_v32 = vld [vmem:[%s1072_s12 + $0x8] sm:$0xff]  ;;  %v305_v36 = vld [vmem:[%s1072_s12 + $0x18] sm:$0xff] }
  0x17   : > { %780 = vmatprep.subr.mxu0 %v296_v10  ;;  %855 = vmatprep.subr.mxu1 %v296_v10  ;;  %v270_v31 = vld [vmem:[%s1189_s1] sm:$0xff]  ;;  %v319_v33 = vld [vmem:[%s1072_s12 + $0x88] sm:$0xff]  ;;  %v321_v37 = vld [vmem:[%s1072_s12 + $0x98] sm:$0xff] }
  0x18   : > { %781 = vmatpush3.msra.mxu0 %v280_v11  ;;  %871 = vmatpush3.msra.mxu1 %v280_v11  ;;  %v302_v34 = vld [vmem:[%s1072_s12] sm:$0xff]  ;;  %v304_v38 = vld [vmem:[%s1072_s12 + $0x10] sm:$0xff]  ;;  %v307_v40 = vld [vmem:[%s1072_s12 + $0x28] sm:$0xff] }
  0x19   : > { %782 = vmatprep.subr.mxu0 %v295_v12  ;;  %856 = vmatprep.subr.mxu1 %v295_v12  ;;  %v318_v35 = vld [vmem:[%s1072_s12 + $0x80] sm:$0xff]  ;;  %v320_v39 = vld [vmem:[%s1072_s12 + $0x90] sm:$0xff]  ;;  %v323_v41 = vld [vmem:[%s1072_s12 + $0xa8] sm:$0xff] }
  0x1a   : > { %783 = vmatpush3.msra.mxu0 %v279_v13  ;;  %872 = vmatpush3.msra.mxu1 %v279_v13  ;;  %v306_v42 = vld [vmem:[%s1072_s12 + $0x20] sm:$0xff]  ;;  %v309_v44 = vld [vmem:[%s1072_s12 + $0x38] sm:$0xff]  ;;  %v308_v46 = vld [vmem:[%s1072_s12 + $0x30] sm:$0xff] }
  0x1b   : > { %784 = vmatprep.subr.mxu0 %v294_v14  ;;  %857 = vmatprep.subr.mxu1 %v294_v14  ;;  %v322_v43 = vld [vmem:[%s1072_s12 + $0xa0] sm:$0xff]  ;;  %v325_v45 = vld [vmem:[%s1072_s12 + $0xb8] sm:$0xff]  ;;  %v324_v47 = vld [vmem:[%s1072_s12 + $0xb0] sm:$0xff] }
  0x1c   : > { %785 = vmatpush3.msra.mxu0 %v278_v15  ;;  %873 = vmatpush3.msra.mxu1 %v278_v15  ;;  %v311_v48 = vld [vmem:[%s1072_s12 + $0x48] sm:$0xff]  ;;  %v310_v50 = vld [vmem:[%s1072_s12 + $0x40] sm:$0xff]  ;;  %v313_v52 = vld [vmem:[%s1072_s12 + $0x58] sm:$0xff] }
  0x1d   : > { %786 = vmatprep.subr.mxu0 %v293_v16  ;;  %858 = vmatprep.subr.mxu1 %v293_v16  ;;  %v327_v49 = vld [vmem:[%s1072_s12 + $0xc8] sm:$0xff]  ;;  %v326_v51 = vld [vmem:[%s1072_s12 + $0xc0] sm:$0xff]  ;;  %v329_v53 = vld [vmem:[%s1072_s12 + $0xd8] sm:$0xff] }
  0x1e   : > { %787 = vmatpush3.msra.mxu0 %v277_v17  ;;  %874 = vmatpush3.msra.mxu1 %v277_v17  ;;  %v312_v54 = vld [vmem:[%s1072_s12 + $0x50] sm:$0xff]  ;;  %v315_v56 = vld [vmem:[%s1072_s12 + $0x68] sm:$0xff]  ;;  %v314_v58 = vld [vmem:[%s1072_s12 + $0x60] sm:$0xff] }
  0x1f   : > { %788 = vmatprep.subr.mxu0 %v292_v18  ;;  %859 = vmatprep.subr.mxu1 %v292_v18  ;;  %v328_v55 = vld [vmem:[%s1072_s12 + $0xd0] sm:$0xff]  ;;  %v331_v57 = vld [vmem:[%s1072_s12 + $0xe8] sm:$0xff]  ;;  %v330_v59 = vld [vmem:[%s1072_s12 + $0xe0] sm:$0xff] }
  0x20   : > { %789 = vmatpush3.msra.mxu0 %v276_v19  ;;  %875 = vmatpush3.msra.mxu1 %v276_v19  ;;  %v317_v60 = vld [vmem:[%s1072_s12 + $0x78] sm:$0xff]  ;;  %v316_v62 = vld [vmem:[%s1072_s12 + $0x70] sm:$0xff]  ;;  %v586_v2 = vld [vmem:[%s254_s24] sm:$0xff] }
  0x21   : > { %790 = vmatprep.subr.mxu0 %v291_v20  ;;  %860 = vmatprep.subr.mxu1 %v291_v20  ;;  %v333_v61 = vld [vmem:[%s1072_s12 + $0xf8] sm:$0xff]  ;;  %v332_v63 = vld [vmem:[%s1072_s12 + $0xf0] sm:$0xff]  ;;  %v594_v3 = vld [vmem:[%s254_s24 + $0x40] sm:$0xff] }
  0x22   : > { %791 = vmatpush3.msra.mxu0 %v275_v21  ;;  %876 = vmatpush3.msra.mxu1 %v275_v21  ;;  %v587_v6 = vld [vmem:[%s254_s24 + $0x8] sm:$0xff]  ;;  %v588_v8 = vld [vmem:[%s254_s24 + $0x10] sm:$0xff]  ;;  %v589_v10 = vld [vmem:[%s254_s24 + $0x18] sm:$0xff] }
  0x23   : > { %792 = vmatprep.subr.mxu0 %v290_v22  ;;  %861 = vmatprep.subr.mxu1 %v290_v22  ;;  %v595_v7 = vld [vmem:[%s254_s24 + $0x48] sm:$0xff]  ;;  %v596_v9 = vld [vmem:[%s254_s24 + $0x50] sm:$0xff]  ;;  %v597_v11 = vld [vmem:[%s254_s24 + $0x58] sm:$0xff] }
  0x24   : > { %793 = vmatpush3.msra.mxu0 %v274_v23  ;;  %877 = vmatpush3.msra.mxu1 %v274_v23  ;;  %v590_v12 = vld [vmem:[%s254_s24 + $0x20] sm:$0xff]  ;;  %v1123_v16 = vld [vmem:[%s254_s24 + $0x28] sm:$0xff]  ;;  %v1127_v18 = vld [vmem:[%s254_s24 + $0x30] sm:$0xff] }
  0x25   : > { %794 = vmatprep.subr.mxu0 %v289_v24  ;;  %862 = vmatprep.subr.mxu1 %v289_v24  ;;  %v1121_v13 = vld [vmem:[%s254_s24 + $0x60] sm:$0xff]  ;;  %v1125_v17 = vld [vmem:[%s254_s24 + $0x68] sm:$0xff]  ;;  %v1134_v21 = vld [vmem:[%s254_s24 + $0x70] sm:$0xff] }
  0x26   : > { %795 = vmatpush3.msra.mxu0 %v273_v25  ;;  %878 = vmatpush3.msra.mxu1 %v273_v25  ;;  %v1136_v22 = vld [vmem:[%s254_s24 + $0x38] sm:$0xff] }
  0x27   : > { %796 = vmatprep.subr.mxu0 %v288_v26  ;;  %863 = vmatprep.subr.mxu1 %v288_v26  ;;  %v1138_v23 = vld [vmem:[%s254_s24 + $0x78] sm:$0xff] }
  0x28   : > { %797 = vmatpush3.msra.mxu0 %v272_v27  ;;  %879 = vmatpush3.msra.mxu1 %v272_v27 }
  0x29   : > { %798 = vmatprep.subr.mxu0 %v287_v28  ;;  %864 = vmatprep.subr.mxu1 %v287_v28 }
  0x2a   : > { %799 = vmatpush3.msra.mxu0 %v271_v29  ;;  %880 = vmatpush3.msra.mxu1 %v271_v29 }
  0x2b   : > { %800 = vmatprep.subr.mxu0 %v286_v30  ;;  %865 = vmatprep.subr.mxu1 %v286_v30 }
  0x2c   : > { %801 = vmatpush3.msra.mxu0 %v270_v31  ;;  %881 = vmatpush3.msra.mxu1 %v270_v31 }
  0x2d   : > { %398 = vmatprep.mubr.f32.mxu0 %v303_v32  ;;  %438 = vmatprep.mubr.f32.mxu1 %v319_v33 }
  0x2e   : > { %399 = vmatmul.mubr.f32.vlgmr.msra.gmra.mxu0 %v302_v34  ;;  %439 = vmatmul.mubr.f32.vlgmr.msra.gmra.mxu1 %v318_v35 }
  0x2f   : > { %403 = vmatprep.mubr.f32.mxu0 %v305_v36  ;;  %443 = vmatprep.mubr.f32.mxu1 %v321_v37 }
  0x32   : > { %404 = vmatmul.mubr.f32.gmra.mxu0 %v304_v38  ;;  %444 = vmatmul.mubr.f32.gmra.mxu1 %v320_v39 }
  0x33   : > { %408 = vmatprep.mubr.f32.mxu0 %v307_v40  ;;  %448 = vmatprep.mubr.f32.mxu1 %v323_v41 }
  0x36   : > { %409 = vmatmul.mubr.f32.gmra.mxu0 %v306_v42  ;;  %449 = vmatmul.mubr.f32.gmra.mxu1 %v322_v43 }
  0x37   : > { %413 = vmatprep.mubr.f32.mxu0 %v309_v44  ;;  %453 = vmatprep.mubr.f32.mxu1 %v325_v45 }
  0x3a   : > { %414 = vmatmul.mubr.f32.gmra.mxu0 %v308_v46  ;;  %454 = vmatmul.mubr.f32.gmra.mxu1 %v324_v47 }
  0x3b   : > { %418 = vmatprep.mubr.f32.mxu0 %v311_v48  ;;  %458 = vmatprep.mubr.f32.mxu1 %v327_v49 }
  0x3e   : > { %419 = vmatmul.mubr.f32.gmra.mxu0 %v310_v50  ;;  %459 = vmatmul.mubr.f32.gmra.mxu1 %v326_v51 }
  0x3f   : > { %423 = vmatprep.mubr.f32.mxu0 %v313_v52  ;;  %463 = vmatprep.mubr.f32.mxu1 %v329_v53 }
  0x42   : > { %424 = vmatmul.mubr.f32.gmra.mxu0 %v312_v54  ;;  %464 = vmatmul.mubr.f32.gmra.mxu1 %v328_v55 }
  0x43   : > { %428 = vmatprep.mubr.f32.mxu0 %v315_v56  ;;  %468 = vmatprep.mubr.f32.mxu1 %v331_v57 }
  0x46   : > { %429 = vmatmul.mubr.f32.gmra.mxu0 %v314_v58  ;;  %469 = vmatmul.mubr.f32.gmra.mxu1 %v330_v59 }
  0x47   : > { %433 = vmatprep.mubr.f32.mxu0 %v317_v60  ;;  %473 = vmatprep.mubr.f32.mxu1 %v333_v61 }
  0x4a   : > { %434 = vmatmul.mubr.f32.gmra.mxu0 %v316_v62  ;;  %474 = vmatmul.mubr.f32.gmra.mxu1 %v332_v63 }
  0xee   : > { %v802_v0 = vpop.f32.mrf.mxu0  ;;  %v826_v1 = vpop.f32.mrf.mxu1 }
  0xf0   : > { %v803_v4 = vpop.f32.mrf.mxu0  ;;  %v827_v5 = vpop.f32.mrf.mxu1 }
  0xf1   : > { %v804_v14 = vadd.f32 %v803_v4, %v802_v0  ;;  %v828_v15 = vadd.f32 %v827_v5, %v826_v1 }
  0xf2   : > { %v805_v19 = vpop.f32.mrf.mxu0  ;;  %v829_v20 = vpop.f32.mrf.mxu1 }
  0xf3   : > { %570 = vst [vmem:[%s1119_s27] sm:$0xff] %v804_v14  ;;  %v602_v24 = vadd.f32 %v804_v14, %v586_v2  ;;  %578 = vst [vmem:[%s1119_s27 + $0x40] sm:$0xff] %v828_v15  ;;  %v610_v25 = vadd.f32 %v828_v15, %v594_v3 }
  0xf4   : > { %v806_v26 = vpop.f32.mrf.mxu0  ;;  %v830_v27 = vpop.f32.mrf.mxu1 }
  0xf5   : > { %v807_v28 = vadd.f32 %v806_v26, %v805_v19  ;;  %v831_v29 = vadd.f32 %v830_v27, %v829_v20  ;;  %618 = vst [vmem:[%s1132_s30] sm:$0xff] %v602_v24  ;;  %626 = vst [vmem:[%s1132_s30 + $0x40] sm:$0xff] %v610_v25 }
  0xf6   : > { %v808_v30 = vpop.f32.mrf.mxu0  ;;  %v832_v31 = vpop.f32.mrf.mxu1 }
  0xf7   : > { %571 = vst [vmem:[%s1119_s27 + $0x8] sm:$0xff] %v807_v28  ;;  %v603_v32 = vadd.f32 %v807_v28, %v587_v6  ;;  %579 = vst [vmem:[%s1119_s27 + $0x48] sm:$0xff] %v831_v29  ;;  %v611_v33 = vadd.f32 %v831_v29, %v595_v7 }
  0xf8   : > { %v809_v34 = vpop.f32.mrf.mxu0  ;;  %v833_v35 = vpop.f32.mrf.mxu1 }
  0xf9   : > { %v810_v36 = vadd.f32 %v809_v34, %v808_v30  ;;  %v834_v37 = vadd.f32 %v833_v35, %v832_v31  ;;  %619 = vst [vmem:[%s1132_s30 + $0x8] sm:$0xff] %v603_v32  ;;  %627 = vst [vmem:[%s1132_s30 + $0x48] sm:$0xff] %v611_v33 }
  0xfa   : > { %v811_v38 = vpop.f32.mrf.mxu0  ;;  %v835_v39 = vpop.f32.mrf.mxu1 }
  0xfb   : > { %572 = vst [vmem:[%s1119_s27 + $0x10] sm:$0xff] %v810_v36  ;;  %v604_v40 = vadd.f32 %v810_v36, %v588_v8  ;;  %580 = vst [vmem:[%s1119_s27 + $0x50] sm:$0xff] %v834_v37  ;;  %v612_v41 = vadd.f32 %v834_v37, %v596_v9 }
  0xfc   : > { %v812_v42 = vpop.f32.mrf.mxu0  ;;  %v836_v43 = vpop.f32.mrf.mxu1 }
  0xfd   : > { %v813_v44 = vadd.f32 %v812_v42, %v811_v38  ;;  %v837_v45 = vadd.f32 %v836_v43, %v835_v39  ;;  %620 = vst [vmem:[%s1132_s30 + $0x10] sm:$0xff] %v604_v40  ;;  %628 = vst [vmem:[%s1132_s30 + $0x50] sm:$0xff] %v612_v41 }
  0xfe   : > { %v814_v46 = vpop.f32.mrf.mxu0  ;;  %v838_v47 = vpop.f32.mrf.mxu1 }
  0xff   : > { %573 = vst [vmem:[%s1119_s27 + $0x18] sm:$0xff] %v813_v44  ;;  %v605_v48 = vadd.f32 %v813_v44, %v589_v10  ;;  %581 = vst [vmem:[%s1119_s27 + $0x58] sm:$0xff] %v837_v45  ;;  %v613_v49 = vadd.f32 %v837_v45, %v597_v11 }
 0x100   : > { %v815_v50 = vpop.f32.mrf.mxu0  ;;  %v839_v51 = vpop.f32.mrf.mxu1 }
 0x101   : > { %v816_v52 = vadd.f32 %v815_v50, %v814_v46  ;;  %v840_v53 = vadd.f32 %v839_v51, %v838_v47  ;;  %621 = vst [vmem:[%s1132_s30 + $0x18] sm:$0xff] %v605_v48  ;;  %629 = vst [vmem:[%s1132_s30 + $0x58] sm:$0xff] %v613_v49 }
 0x102   : > { %v817_v54 = vpop.f32.mrf.mxu0  ;;  %v841_v55 = vpop.f32.mrf.mxu1 }
 0x103   : > { %574 = vst [vmem:[%s1119_s27 + $0x20] sm:$0xff] %v816_v52  ;;  %v606_v56 = vadd.f32 %v816_v52, %v590_v12  ;;  %582 = vst [vmem:[%s1119_s27 + $0x60] sm:$0xff] %v840_v53  ;;  %v614_v57 = vadd.f32 %v840_v53, %v1121_v13 }
 0x104   : > { %v818_v58 = vpop.f32.mrf.mxu0  ;;  %v842_v59 = vpop.f32.mrf.mxu1 }
 0x105   : > { %v819_v60 = vadd.f32 %v818_v58, %v817_v54  ;;  %v843_v61 = vadd.f32 %v842_v59, %v841_v55  ;;  %622 = vst [vmem:[%s1132_s30 + $0x20] sm:$0xff] %v606_v56  ;;  %630 = vst [vmem:[%s1132_s30 + $0x60] sm:$0xff] %v614_v57 }
 0x106   : > { %v820_v62 = vpop.f32.mrf.mxu0  ;;  %v844_v63 = vpop.f32.mrf.mxu1 }
 0x107   : > { %575 = vst [vmem:[%s1119_s27 + $0x28] sm:$0xff] %v819_v60  ;;  %v607_v0 = vadd.f32 %v819_v60, %v1123_v16  ;;  %583 = vst [vmem:[%s1119_s27 + $0x68] sm:$0xff] %v843_v61  ;;  %v615_v1 = vadd.f32 %v843_v61, %v1125_v17 }
 0x108   : > { %v821_v2 = vpop.f32.mrf.mxu0  ;;  %v845_v3 = vpop.f32.mrf.mxu1 }
 0x109   : > { %v822_v4 = vadd.f32 %v821_v2, %v820_v62  ;;  %v846_v5 = vadd.f32 %v845_v3, %v844_v63  ;;  %623 = vst [vmem:[%s1132_s30 + $0x28] sm:$0xff] %v607_v0  ;;  %631 = vst [vmem:[%s1132_s30 + $0x68] sm:$0xff] %v615_v1 }
 0x10a   : > { %v823_v6 = vpop.f32.mrf.mxu0  ;;  %v847_v7 = vpop.f32.mrf.mxu1 }
 0x10b   : > { %576 = vst [vmem:[%s1119_s27 + $0x30] sm:$0xff] %v822_v4  ;;  %v608_v8 = vadd.f32 %v822_v4, %v1127_v18  ;;  %584 = vst [vmem:[%s1119_s27 + $0x70] sm:$0xff] %v846_v5  ;;  %v616_v9 = vadd.f32 %v846_v5, %v1134_v21 }
 0x10c   : > { %v824_v10 = vpop.f32.mrf.mxu0  ;;  %v848_v11 = vpop.f32.mrf.mxu1 }
 0x10d   : > { %v825_v12 = vadd.f32 %v824_v10, %v823_v6  ;;  %v849_v13 = vadd.f32 %v848_v11, %v847_v7  ;;  %624 = vst [vmem:[%s1132_s30 + $0x30] sm:$0xff] %v608_v8  ;;  %632 = vst [vmem:[%s1132_s30 + $0x70] sm:$0xff] %v616_v9 }
 0x10f   : > { %577 = vst [vmem:[%s1119_s27 + $0x38] sm:$0xff] %v825_v12  ;;  %v609_v14 = vadd.f32 %v825_v12, %v1136_v22  ;;  %585 = vst [vmem:[%s1119_s27 + $0x78] sm:$0xff] %v849_v13  ;;  %v617_v15 = vadd.f32 %v849_v13, %v1138_v23 }
 0x111   : > { %625 = vst [vmem:[%s1132_s30 + $0x38] sm:$0xff] %v609_v14  ;;  %633 = vst [vmem:[%s1132_s30 + $0x78] sm:$0xff] %v617_v15 }
 0x112 PF: > { %s15_s17 = sadd.s32 1, %s928_s17   ;;  %s1193_s15 = smov %s924_s16 }
 0x113   : > { %p12_p5 = scmp.ge.s32.totalorder %s15_s17, 4   ;;  %s1194_s16 = smov %s1196_s18 }
 0x115   :  { %14 = sbr.rel (!%p12_p5) target bundleno = 2 (0x2), region = 90 }

// kernel: lightgcn_s_forward.5
= control target key start
LH: loop header
LB: loop body
LE: loop exit
PB: predicated region body
PF: predicated region fallthrough
CT: control target
= control target key end

     0   :  { %10 = vsyncpa [#allocation4], 0  ;;  %s1421_s0 = inlined_call_operand.vmem [shape: f32[256,256], index: 0, kind: input, shape index: {}]   ;;  %s1422_s1 = inlined_call_operand.vmem [shape: f32[256,128], index: 1, kind: input, shape index: {}]   ;;  %s1423_s2 = inlined_call_operand.vmem [shape: f32[256,128], index: 2, kind: input, shape index: {}, may-alias: {2,4}]   ;;  %s1424_s3 = inlined_call_operand.hbm [shape: f32[256,128], index: 3, kind: output, shape index: {0}]   ;;  %s1425_s4 = inlined_call_operand.vmem [shape: f32[256,128], index: 4, kind: output, shape index: {1}, may-alias: {2,4}]  }
   0x1   :  { %12 = vsyncpa [#allocation4 + $0x1], 0  ;;  %s1081_s15 = smov 0   ;;  %s1083_s16 = smov 0  }
   0x2   :  { %s1085_s17 = smov 0   ;;  %s1087_s18 = smov 0  }
   0x3   :  { %s1089_s19 = smov 0   ;;  %s1091_s20 = smov 0  }
   0x4 LB: > { %s786_s21 = sadd.s32 4294967295, %s1051_s20   ;;  %s787_s22 = sadd.s32 4294967294, %s1051_s20   ;;  %s1051_s20 = sphi %s1091_s20, %s18_s20   ;;  %s1047_s19 = sphi %s1089_s19, %s1432_s19   ;;  %s1043_s18 = sphi %s1087_s18, %s1431_s18   ;;  %s1039_s17 = sphi %s1085_s17, %s1430_s17   ;;  %s1035_s16 = sphi %s1083_s16, %s1429_s16   ;;  %s1031_s15 = sphi %s1081_s15, %s1428_s15  }
   0x5   : > { %s30_s23 = sadd.s32 1, %s1047_s19  ;;  %s112_s24 = sadd.s32 1, %s1039_s17 }
   0x6   : > { %p32_p0 = scmp.ge.s32.totalorder %s30_s23, 2  ;;  %p122_p1 = scmp.ne.s32.totalorder %s1039_s17, %s1035_s16 }
   0x7   : > { %p123_p2 = scmp.eq.s32.totalorder %s786_s21, 1  ;;  %p128_p3 = scmp.ne.s32.totalorder %s1035_s16, %s1031_s15 }
   0x8   : > { %s1434_s23 = smov (%p32_p0, %s30_s23), 0  ;;  %p129_p5 = scmp.eq.s32.totalorder %s787_s22, 1 }
   0x9   : > { %p1121_p4 = por %p123_p2, %p122_p1  ;;  %s109_s26 = ssub.s32 %s1047_s19, %s1434_s23 }
   0xa   : > { %p790_p6 = scmp.ge.s32.totalorder %s1051_s20, 1  ;;  %p110_p7 = scmp.eq.s32.totalorder %s109_s26, 0 }
   0xb   : > { %p1128_p8 = por %p129_p5, %p128_p3  ;;  %p200_p9 = scmp.lt.s32.totalorder %s1051_s20, 3 }
   0xc   : > { %s1134_s28 = scalar_select %p110_p7, %s1039_s17, %s112_s24  }
   0xd   : > { %p201_p10 = pnand %p790_p6, %p200_p9 }
   0xe   : > { %s792_s29 = sshll.u32 (!%p201_p10), %s1043_s18, 4  ;;  %s231_s10 = sand.u32 (!%p201_p10), 1, %s1035_s16  }
   0xf   : > { %204 = sbr.rel (%p201_p10) target bundleno = 295 (0x127), region = 32  ;;  %p243_p11 = scmp.lt.s32.totalorder (!%p201_p10), %s792_s29, 31 }
  0x10   : > { %s791_s12 = sshll.u32 (!%p201_p10), %s231_s10, 7  ;;  %s1374_s8 = scalar_lea.sflag (!%p201_p10), [#allocation4], %s231_s10 }
  0x11   : > { %s1298_s22 = scalar_lea.vmem (!%p201_p10), [#allocation3], %s791_s12 }
  0x14   : > { %v299_v0 = vld [vmem:[%s1422_s1 + $0xf8] sm:$0xff]  ;;  %v298_v2 = vld [vmem:[%s1422_s1 + $0xf0] sm:$0xff]  ;;  %v297_v4 = vld [vmem:[%s1422_s1 + $0xe8] sm:$0xff]  ;;  %s1436_s29 = smov (!%p243_p11, %s792_s29), 31 }
  0x15   : > { %v283_v1 = vld [vmem:[%s1422_s1 + $0x78] sm:$0xff]  ;;  %806 = vmatprep.subr.mxu0 %v299_v0  ;;  %886 = vmatprep.subr.mxu1 %v299_v0  ;;  %v282_v3 = vld [vmem:[%s1422_s1 + $0x70] sm:$0xff]  ;;  %v281_v5 = vld [vmem:[%s1422_s1 + $0x68] sm:$0xff]  ;;  %s804_s11 = sshll.u32 %s1436_s29, 4 }
  0x16   : > { %807 = vmatpush3.msra.mxu0 %v283_v1  ;;  %902 = vmatpush3.msra.mxu1 %v283_v1  ;;  %v296_v6 = vld [vmem:[%s1422_s1 + $0xe0] sm:$0xff]  ;;  %v295_v8 = vld [vmem:[%s1422_s1 + $0xd8] sm:$0xff]  ;;  %v294_v10 = vld [vmem:[%s1422_s1 + $0xd0] sm:$0xff]  ;;  %s1233_s5 = scalar_lea.vmem %s1421_s0, %s804_s11  ;;  %s796_s11 = sshll.u32 %s1436_s29, 3 }
  0x17   : > { %808 = vmatprep.subr.mxu0 %v298_v2  ;;  %887 = vmatprep.subr.mxu1 %v298_v2  ;;  %v280_v7 = vld [vmem:[%s1422_s1 + $0x60] sm:$0xff]  ;;  %v279_v9 = vld [vmem:[%s1422_s1 + $0x58] sm:$0xff]  ;;  %v278_v11 = vld [vmem:[%s1422_s1 + $0x50] sm:$0xff]  ;;  %s1282_s21 = scalar_lea.vmem %s1423_s2, %s796_s11  ;;  %s1316_s30 = scalar_lea.vmem %s1425_s4, %s796_s11 }
  0x18   : > { %809 = vmatpush3.msra.mxu0 %v282_v3  ;;  %903 = vmatpush3.msra.mxu1 %v282_v3  ;;  %v293_v12 = vld [vmem:[%s1422_s1 + $0xc8] sm:$0xff]  ;;  %v292_v14 = vld [vmem:[%s1422_s1 + $0xc0] sm:$0xff]  ;;  %v291_v16 = vld [vmem:[%s1422_s1 + $0xb8] sm:$0xff]  ;;  %s805_s29 = sshll.u32 %s1043_s18, 11  ;;  %s1053_s11 = smov [#allocation3]  }
  0x19   : > { %810 = vmatprep.subr.mxu0 %v297_v4  ;;  %888 = vmatprep.subr.mxu1 %v297_v4  ;;  %v277_v13 = vld [vmem:[%s1422_s1 + $0x48] sm:$0xff]  ;;  %v276_v15 = vld [vmem:[%s1422_s1 + $0x40] sm:$0xff]  ;;  %v275_v17 = vld [vmem:[%s1422_s1 + $0x38] sm:$0xff]  ;;  %s1362_s7 = scalar_lea.hbm %s1424_s3, %s805_s29  ;;  %s979_s12 = sshll.u32 %s1053_s11, 4  ;;  %s980_s12 = int_to_ptr.vmem [resolvable:$false] %s979_s12 }
  0x1a   : > { %811 = vmatpush3.msra.mxu0 %v281_v5  ;;  %904 = vmatpush3.msra.mxu1 %v281_v5  ;;  %v290_v18 = vld [vmem:[%s1422_s1 + $0xb0] sm:$0xff]  ;;  %v289_v20 = vld [vmem:[%s1422_s1 + $0xa8] sm:$0xff]  ;;  %v288_v22 = vld [vmem:[%s1422_s1 + $0xa0] sm:$0xff]  ;;  %s981_s13 = scalar_lea.vmem %s980_s12, 4096 }
  0x1b   : > { %812 = vmatprep.subr.mxu0 %v296_v6  ;;  %889 = vmatprep.subr.mxu1 %v296_v6  ;;  %v274_v19 = vld [vmem:[%s1422_s1 + $0x30] sm:$0xff]  ;;  %v273_v21 = vld [vmem:[%s1422_s1 + $0x28] sm:$0xff]  ;;  %v272_v23 = vld [vmem:[%s1422_s1 + $0x20] sm:$0xff] }
  0x1c   : > { %813 = vmatpush3.msra.mxu0 %v280_v7  ;;  %905 = vmatpush3.msra.mxu1 %v280_v7  ;;  %v287_v24 = vld [vmem:[%s1422_s1 + $0x98] sm:$0xff]  ;;  %v286_v26 = vld [vmem:[%s1422_s1 + $0x90] sm:$0xff]  ;;  %v285_v28 = vld [vmem:[%s1422_s1 + $0x88] sm:$0xff] }
  0x1d   : > { %814 = vmatprep.subr.mxu0 %v295_v8  ;;  %890 = vmatprep.subr.mxu1 %v295_v8  ;;  %v271_v25 = vld [vmem:[%s1422_s1 + $0x18] sm:$0xff]  ;;  %v270_v27 = vld [vmem:[%s1422_s1 + $0x10] sm:$0xff]  ;;  %v269_v29 = vld [vmem:[%s1422_s1 + $0x8] sm:$0xff] }
  0x1e   : > { %815 = vmatpush3.msra.mxu0 %v279_v9  ;;  %906 = vmatpush3.msra.mxu1 %v279_v9  ;;  %v284_v30 = vld [vmem:[%s1422_s1 + $0x80] sm:$0xff]  ;;  %v301_v32 = vld [vmem:[%s1233_s5 + $0x8] sm:$0xff]  ;;  %v303_v36 = vld [vmem:[%s1233_s5 + $0x18] sm:$0xff] }
  0x1f   : > { %816 = vmatprep.subr.mxu0 %v294_v10  ;;  %891 = vmatprep.subr.mxu1 %v294_v10  ;;  %v268_v31 = vld [vmem:[%s1422_s1] sm:$0xff]  ;;  %v317_v33 = vld [vmem:[%s1233_s5 + $0x88] sm:$0xff]  ;;  %v319_v37 = vld [vmem:[%s1233_s5 + $0x98] sm:$0xff] }
  0x20   : > { %817 = vmatpush3.msra.mxu0 %v278_v11  ;;  %907 = vmatpush3.msra.mxu1 %v278_v11  ;;  %v300_v34 = vld [vmem:[%s1233_s5] sm:$0xff]  ;;  %v302_v38 = vld [vmem:[%s1233_s5 + $0x10] sm:$0xff]  ;;  %v305_v40 = vld [vmem:[%s1233_s5 + $0x28] sm:$0xff] }
  0x21   : > { %818 = vmatprep.subr.mxu0 %v293_v12  ;;  %892 = vmatprep.subr.mxu1 %v293_v12  ;;  %v316_v35 = vld [vmem:[%s1233_s5 + $0x80] sm:$0xff]  ;;  %v318_v39 = vld [vmem:[%s1233_s5 + $0x90] sm:$0xff]  ;;  %v321_v41 = vld [vmem:[%s1233_s5 + $0xa8] sm:$0xff] }
  0x22   : > { %819 = vmatpush3.msra.mxu0 %v277_v13  ;;  %908 = vmatpush3.msra.mxu1 %v277_v13  ;;  %v304_v42 = vld [vmem:[%s1233_s5 + $0x20] sm:$0xff]  ;;  %v307_v44 = vld [vmem:[%s1233_s5 + $0x38] sm:$0xff]  ;;  %v306_v46 = vld [vmem:[%s1233_s5 + $0x30] sm:$0xff] }
  0x23   : > { %820 = vmatprep.subr.mxu0 %v292_v14  ;;  %893 = vmatprep.subr.mxu1 %v292_v14  ;;  %v320_v43 = vld [vmem:[%s1233_s5 + $0xa0] sm:$0xff]  ;;  %v323_v45 = vld [vmem:[%s1233_s5 + $0xb8] sm:$0xff]  ;;  %v322_v47 = vld [vmem:[%s1233_s5 + $0xb0] sm:$0xff] }
  0x24   : > { %821 = vmatpush3.msra.mxu0 %v276_v15  ;;  %909 = vmatpush3.msra.mxu1 %v276_v15  ;;  %v309_v48 = vld [vmem:[%s1233_s5 + $0x48] sm:$0xff]  ;;  %v308_v50 = vld [vmem:[%s1233_s5 + $0x40] sm:$0xff]  ;;  %v311_v52 = vld [vmem:[%s1233_s5 + $0x58] sm:$0xff] }
  0x25   : > { %822 = vmatprep.subr.mxu0 %v291_v16  ;;  %894 = vmatprep.subr.mxu1 %v291_v16  ;;  %v325_v49 = vld [vmem:[%s1233_s5 + $0xc8] sm:$0xff]  ;;  %v324_v51 = vld [vmem:[%s1233_s5 + $0xc0] sm:$0xff]  ;;  %v327_v53 = vld [vmem:[%s1233_s5 + $0xd8] sm:$0xff] }
  0x26   : > { %823 = vmatpush3.msra.mxu0 %v275_v17  ;;  %910 = vmatpush3.msra.mxu1 %v275_v17  ;;  %v310_v54 = vld [vmem:[%s1233_s5 + $0x50] sm:$0xff]  ;;  %v313_v56 = vld [vmem:[%s1233_s5 + $0x68] sm:$0xff]  ;;  %v312_v58 = vld [vmem:[%s1233_s5 + $0x60] sm:$0xff] }
  0x27   : > { %824 = vmatprep.subr.mxu0 %v290_v18  ;;  %895 = vmatprep.subr.mxu1 %v290_v18  ;;  %v326_v55 = vld [vmem:[%s1233_s5 + $0xd0] sm:$0xff]  ;;  %v329_v57 = vld [vmem:[%s1233_s5 + $0xe8] sm:$0xff]  ;;  %v328_v59 = vld [vmem:[%s1233_s5 + $0xe0] sm:$0xff] }
  0x28   : > { %825 = vmatpush3.msra.mxu0 %v274_v19  ;;  %911 = vmatpush3.msra.mxu1 %v274_v19  ;;  %v315_v60 = vld [vmem:[%s1233_s5 + $0x78] sm:$0xff]  ;;  %v314_v62 = vld [vmem:[%s1233_s5 + $0x70] sm:$0xff]  ;;  %v584_v3 = vld [vmem:[%s1282_s21] sm:$0xff] }
  0x29   : > { %826 = vmatprep.subr.mxu0 %v289_v20  ;;  %896 = vmatprep.subr.mxu1 %v289_v20  ;;  %v331_v61 = vld [vmem:[%s1233_s5 + $0xf8] sm:$0xff]  ;;  %v330_v63 = vld [vmem:[%s1233_s5 + $0xf0] sm:$0xff]  ;;  %v592_v5 = vld [vmem:[%s1282_s21 + $0x40] sm:$0xff]  ;;  %s667_s5 = sshll.u32 %s1298_s22, 4  ;;  %s1364_s5 = int_to_ptr.vmem [resolvable:$true] %s667_s5 }
  0x2a   : > { %827 = vmatpush3.msra.mxu0 %v273_v21  ;;  %912 = vmatpush3.msra.mxu1 %v273_v21  ;;  %v585_v10 = vld [vmem:[%s1282_s21 + $0x8] sm:$0xff]  ;;  %v586_v12 = vld [vmem:[%s1282_s21 + $0x10] sm:$0xff]  ;;  %v587_v14 = vld [vmem:[%s1282_s21 + $0x18] sm:$0xff]  ;;  %s975_s9 = scalar_lea.vmem %s1364_s5, 2048  ;;  %p982_p1 = scmp.lt.s32.totalorder %s1364_s5, %s980_s12 }
  0x2b   : > { %828 = vmatprep.subr.mxu0 %v288_v22  ;;  %897 = vmatprep.subr.mxu1 %v288_v22  ;;  %v593_v11 = vld [vmem:[%s1282_s21 + $0x48] sm:$0xff]  ;;  %v594_v13 = vld [vmem:[%s1282_s21 + $0x50] sm:$0xff]  ;;  %v595_v15 = vld [vmem:[%s1282_s21 + $0x58] sm:$0xff]  ;;  %p976_p12 = scmp.ne.s32.totalorder %s1364_s5, %s975_s9  ;;  %p983_p2 = scmp.lt.s32.totalorder %s981_s13, %s975_s9 }
  0x2c   : > { %829 = vmatpush3.msra.mxu0 %v272_v23  ;;  %913 = vmatpush3.msra.mxu1 %v272_v23  ;;  %v1293_v16 = vld [vmem:[%s1282_s21 + $0x20] sm:$0xff]  ;;  %v1303_v20 = vld [vmem:[%s1282_s21 + $0x28] sm:$0xff]  ;;  %v1309_v22 = vld [vmem:[%s1282_s21 + $0x30] sm:$0xff] }
  0x2d   : > { %830 = vmatprep.subr.mxu0 %v287_v24  ;;  %898 = vmatprep.subr.mxu1 %v287_v24  ;;  %v1296_v17 = vld [vmem:[%s1282_s21 + $0x60] sm:$0xff]  ;;  %v1306_v21 = vld [vmem:[%s1282_s21 + $0x68] sm:$0xff]  ;;  %p977_p13 = pnand %p976_p12, %p1121_p4  ;;  %p984_p3 = por %p983_p2, %p982_p1 }
  0x2e   : > { %831 = vmatpush3.msra.mxu0 %v271_v25  ;;  %914 = vmatpush3.msra.mxu1 %v271_v25  ;;  %v1319_v25 = vld [vmem:[%s1282_s21 + $0x70] sm:$0xff] }
  0x2f   : > { %832 = vmatprep.subr.mxu0 %v286_v26  ;;  %899 = vmatprep.subr.mxu1 %v286_v26  ;;  %v1322_v26 = vld [vmem:[%s1282_s21 + $0x38] sm:$0xff]  ;;  %p978_p0 = pneg %p977_p13 }
  0x30   : > { %833 = vmatpush3.msra.mxu0 %v270_v27  ;;  %915 = vmatpush3.msra.mxu1 %v270_v27  ;;  %v1325_v27 = vld [vmem:[%s1282_s21 + $0x78] sm:$0xff] }
  0x31   : > { %834 = vmatprep.subr.mxu0 %v285_v28  ;;  %900 = vmatprep.subr.mxu1 %v285_v28  ;;  %p985_p5 = pnand %p984_p3, %p978_p0 }
  0x32   : > { %835 = vmatpush3.msra.mxu0 %v269_v29  ;;  %916 = vmatpush3.msra.mxu1 %v269_v29 }
  0x33   : > { %836 = vmatprep.subr.mxu0 %v284_v30  ;;  %901 = vmatprep.subr.mxu1 %v284_v30 }
  0x34   : > { %837 = vmatpush3.msra.mxu0 %v268_v31  ;;  %917 = vmatpush3.msra.mxu1 %v268_v31 }
  0x35   : > { %396 = vmatprep.mubr.f32.mxu0 %v301_v32  ;;  %436 = vmatprep.mubr.f32.mxu1 %v317_v33 }
  0x36   : > { %397 = vmatmul.mubr.f32.vlgmr.msra.gmra.mxu0 %v300_v34  ;;  %437 = vmatmul.mubr.f32.vlgmr.msra.gmra.mxu1 %v316_v35 }
  0x37   : > { %401 = vmatprep.mubr.f32.mxu0 %v303_v36  ;;  %441 = vmatprep.mubr.f32.mxu1 %v319_v37 }
  0x3a   : > { %402 = vmatmul.mubr.f32.gmra.mxu0 %v302_v38  ;;  %442 = vmatmul.mubr.f32.gmra.mxu1 %v318_v39 }
  0x3b   : > { %406 = vmatprep.mubr.f32.mxu0 %v305_v40  ;;  %446 = vmatprep.mubr.f32.mxu1 %v321_v41 }
  0x3e   : > { %407 = vmatmul.mubr.f32.gmra.mxu0 %v304_v42  ;;  %447 = vmatmul.mubr.f32.gmra.mxu1 %v320_v43 }
  0x3f   : > { %411 = vmatprep.mubr.f32.mxu0 %v307_v44  ;;  %451 = vmatprep.mubr.f32.mxu1 %v323_v45 }
  0x42   : > { %412 = vmatmul.mubr.f32.gmra.mxu0 %v306_v46  ;;  %452 = vmatmul.mubr.f32.gmra.mxu1 %v322_v47 }
  0x43   : > { %416 = vmatprep.mubr.f32.mxu0 %v309_v48  ;;  %456 = vmatprep.mubr.f32.mxu1 %v325_v49 }
  0x46   : > { %417 = vmatmul.mubr.f32.gmra.mxu0 %v308_v50  ;;  %457 = vmatmul.mubr.f32.gmra.mxu1 %v324_v51 }
  0x47   : > { %421 = vmatprep.mubr.f32.mxu0 %v311_v52  ;;  %461 = vmatprep.mubr.f32.mxu1 %v327_v53 }
  0x4a   : > { %422 = vmatmul.mubr.f32.gmra.mxu0 %v310_v54  ;;  %462 = vmatmul.mubr.f32.gmra.mxu1 %v326_v55 }
  0x4b   : > { %426 = vmatprep.mubr.f32.mxu0 %v313_v56  ;;  %466 = vmatprep.mubr.f32.mxu1 %v329_v57 }
  0x4e   : > { %427 = vmatmul.mubr.f32.gmra.mxu0 %v312_v58  ;;  %467 = vmatmul.mubr.f32.gmra.mxu1 %v328_v59 }
  0x4f   : > { %431 = vmatprep.mubr.f32.mxu0 %v315_v60  ;;  %471 = vmatprep.mubr.f32.mxu1 %v331_v61 }
  0x52   : > { %432 = vmatmul.mubr.f32.gmra.mxu0 %v314_v62  ;;  %472 = vmatmul.mubr.f32.gmra.mxu1 %v330_v63 }
  0xf6   : > { %v838_v0 = vpop.f32.mrf.mxu0  ;;  %v862_v1 = vpop.f32.mrf.mxu1 }
  0xf8   : > { %v839_v2 = vpop.f32.mrf.mxu0  ;;  %v863_v4 = vpop.f32.mrf.mxu1 }
  0xf9   : > { %v840_v6 = vadd.f32 %v839_v2, %v838_v0  ;;  %v864_v7 = vadd.f32 %v863_v4, %v862_v1 }
  0xfa   : > { %v841_v8 = vpop.f32.mrf.mxu0  ;;  %v865_v9 = vpop.f32.mrf.mxu1 }
  0xfb   : > { %568 = vst [vmem:[%s1298_s22] sm:$0xff] %v840_v6  ;;  %v600_v18 = vadd.f32 %v840_v6, %v584_v3  ;;  %576 = vst [vmem:[%s1298_s22 + $0x40] sm:$0xff] %v864_v7  ;;  %v608_v19 = vadd.f32 %v864_v7, %v592_v5 }
  0xfc   : > { %v842_v23 = vpop.f32.mrf.mxu0  ;;  %v866_v24 = vpop.f32.mrf.mxu1 }
  0xfd   : > { %v616_v28 = vmul.f32 0.25, %v600_v18  ;;  %v624_v29 = vmul.f32 0.25, %v608_v19  ;;  %v843_v30 = vadd.f32 %v842_v23, %v841_v8  ;;  %v867_v31 = vadd.f32 %v866_v24, %v865_v9 }
  0xfe   : > { %v844_v32 = vpop.f32.mrf.mxu0  ;;  %v868_v33 = vpop.f32.mrf.mxu1 }
  0xff   : > { %569 = vst [vmem:[%s1298_s22 + $0x8] sm:$0xff] %v843_v30  ;;  %v601_v34 = vadd.f32 %v843_v30, %v585_v10  ;;  %577 = vst [vmem:[%s1298_s22 + $0x48] sm:$0xff] %v867_v31  ;;  %v609_v35 = vadd.f32 %v867_v31, %v593_v11 }
 0x100   : > { %632 = vst [vmem:[%s1316_s30] sm:$0xff] %v616_v28  ;;  %640 = vst [vmem:[%s1316_s30 + $0x40] sm:$0xff] %v624_v29  ;;  %v845_v36 = vpop.f32.mrf.mxu0  ;;  %v869_v37 = vpop.f32.mrf.mxu1 }
 0x101   : > { %v617_v38 = vmul.f32 0.25, %v601_v34  ;;  %v625_v39 = vmul.f32 0.25, %v609_v35  ;;  %v846_v40 = vadd.f32 %v845_v36, %v844_v32  ;;  %v870_v41 = vadd.f32 %v869_v37, %v868_v33 }
 0x102   : > { %v847_v42 = vpop.f32.mrf.mxu0  ;;  %v871_v43 = vpop.f32.mrf.mxu1 }
 0x103   : > { %570 = vst [vmem:[%s1298_s22 + $0x10] sm:$0xff] %v846_v40  ;;  %v602_v44 = vadd.f32 %v846_v40, %v586_v12  ;;  %578 = vst [vmem:[%s1298_s22 + $0x50] sm:$0xff] %v870_v41  ;;  %v610_v45 = vadd.f32 %v870_v41, %v594_v13 }
 0x104   : > { %633 = vst [vmem:[%s1316_s30 + $0x8] sm:$0xff] %v617_v38  ;;  %641 = vst [vmem:[%s1316_s30 + $0x48] sm:$0xff] %v625_v39  ;;  %v848_v46 = vpop.f32.mrf.mxu0  ;;  %v872_v47 = vpop.f32.mrf.mxu1 }
 0x105   : > { %v618_v48 = vmul.f32 0.25, %v602_v44  ;;  %v626_v49 = vmul.f32 0.25, %v610_v45  ;;  %v849_v50 = vadd.f32 %v848_v46, %v847_v42  ;;  %v873_v51 = vadd.f32 %v872_v47, %v871_v43 }
 0x106   : > { %v850_v52 = vpop.f32.mrf.mxu0  ;;  %v874_v53 = vpop.f32.mrf.mxu1 }
 0x107   : > { %571 = vst [vmem:[%s1298_s22 + $0x18] sm:$0xff] %v849_v50  ;;  %v603_v54 = vadd.f32 %v849_v50, %v587_v14  ;;  %579 = vst [vmem:[%s1298_s22 + $0x58] sm:$0xff] %v873_v51  ;;  %v611_v55 = vadd.f32 %v873_v51, %v595_v15 }
 0x108   : > { %634 = vst [vmem:[%s1316_s30 + $0x10] sm:$0xff] %v618_v48  ;;  %642 = vst [vmem:[%s1316_s30 + $0x50] sm:$0xff] %v626_v49  ;;  %v851_v56 = vpop.f32.mrf.mxu0  ;;  %v875_v57 = vpop.f32.mrf.mxu1 }
 0x109   : > { %v619_v58 = vmul.f32 0.25, %v603_v54  ;;  %v627_v59 = vmul.f32 0.25, %v611_v55  ;;  %v852_v60 = vadd.f32 %v851_v56, %v850_v52  ;;  %v876_v61 = vadd.f32 %v875_v57, %v874_v53 }
 0x10a   : > { %v853_v62 = vpop.f32.mrf.mxu0  ;;  %v877_v63 = vpop.f32.mrf.mxu1 }
 0x10b   : > { %572 = vst [vmem:[%s1298_s22 + $0x20] sm:$0xff] %v852_v60  ;;  %v604_v0 = vadd.f32 %v852_v60, %v1293_v16  ;;  %580 = vst [vmem:[%s1298_s22 + $0x60] sm:$0xff] %v876_v61  ;;  %v612_v1 = vadd.f32 %v876_v61, %v1296_v17 }
 0x10c   : > { %635 = vst [vmem:[%s1316_s30 + $0x18] sm:$0xff] %v619_v58  ;;  %643 = vst [vmem:[%s1316_s30 + $0x58] sm:$0xff] %v627_v59  ;;  %v854_v2 = vpop.f32.mrf.mxu0  ;;  %v878_v3 = vpop.f32.mrf.mxu1 }
 0x10d   : > { %v620_v4 = vmul.f32 0.25, %v604_v0  ;;  %v628_v5 = vmul.f32 0.25, %v612_v1  ;;  %v855_v6 = vadd.f32 %v854_v2, %v853_v62  ;;  %v879_v7 = vadd.f32 %v878_v3, %v877_v63 }
 0x10e   : > { %v856_v8 = vpop.f32.mrf.mxu0  ;;  %v880_v9 = vpop.f32.mrf.mxu1 }
 0x10f   : > { %573 = vst [vmem:[%s1298_s22 + $0x28] sm:$0xff] %v855_v6  ;;  %v605_v10 = vadd.f32 %v855_v6, %v1303_v20  ;;  %581 = vst [vmem:[%s1298_s22 + $0x68] sm:$0xff] %v879_v7  ;;  %v613_v11 = vadd.f32 %v879_v7, %v1306_v21 }
 0x110   : > { %636 = vst [vmem:[%s1316_s30 + $0x20] sm:$0xff] %v620_v4  ;;  %644 = vst [vmem:[%s1316_s30 + $0x60] sm:$0xff] %v628_v5  ;;  %v857_v12 = vpop.f32.mrf.mxu0  ;;  %v881_v13 = vpop.f32.mrf.mxu1 }
 0x111   : > { %v621_v14 = vmul.f32 0.25, %v605_v10  ;;  %v629_v15 = vmul.f32 0.25, %v613_v11  ;;  %v858_v16 = vadd.f32 %v857_v12, %v856_v8  ;;  %v882_v17 = vadd.f32 %v881_v13, %v880_v9 }
 0x112   : > { %v859_v18 = vpop.f32.mrf.mxu0  ;;  %v883_v19 = vpop.f32.mrf.mxu1 }
 0x113   : > { %574 = vst [vmem:[%s1298_s22 + $0x30] sm:$0xff] %v858_v16  ;;  %v606_v20 = vadd.f32 %v858_v16, %v1309_v22  ;;  %582 = vst [vmem:[%s1298_s22 + $0x70] sm:$0xff] %v882_v17  ;;  %v614_v21 = vadd.f32 %v882_v17, %v1319_v25 }
 0x114   : > { %637 = vst [vmem:[%s1316_s30 + $0x28] sm:$0xff] %v621_v14  ;;  %645 = vst [vmem:[%s1316_s30 + $0x68] sm:$0xff] %v629_v15  ;;  %v860_v23 = vpop.f32.mrf.mxu0  ;;  %v884_v24 = vpop.f32.mrf.mxu1 }
 0x115   : > { %v622_v22 = vmul.f32 0.25, %v606_v20  ;;  %v630_v28 = vmul.f32 0.25, %v614_v21  ;;  %v861_v29 = vadd.f32 %v860_v23, %v859_v18  ;;  %v885_v25 = vadd.f32 %v884_v24, %v883_v19 }
 0x117   : > { %575 = vst [vmem:[%s1298_s22 + $0x38] sm:$0xff] %v861_v29  ;;  %v607_v30 = vadd.f32 %v861_v29, %v1322_v26  ;;  %583 = vst [vmem:[%s1298_s22 + $0x78] sm:$0xff] %v885_v25  ;;  %v615_v31 = vadd.f32 %v885_v25, %v1325_v27 }
 0x118   : > { %638 = vst [vmem:[%s1316_s30 + $0x30] sm:$0xff] %v622_v22  ;;  %646 = vst [vmem:[%s1316_s30 + $0x70] sm:$0xff] %v630_v28 }
 0x119   : > { %988 = shalt.err (!%p985_p5)
}
 0x11a   : > { %s989_s10 = scalar_lea.hbm %s1362_s7, 2048  ;;  %s993_s22 = scalar_lea.hbm %s1424_s3, 4096 }
 0x11b   : > { %p990_p6 = scmp.ne.s32.totalorder %s1362_s7, %s989_s10  ;;  %p994_p10 = scmp.lt.s32.totalorder %s1362_s7, %s1424_s3 }
 0x11c   : > { %p995_p11 = scmp.lt.s32.totalorder %s993_s22, %s989_s10 }
 0x11d   : > { %p991_p7 = pnand %p990_p6, %p1121_p4 }
 0x11e   : > { %p996_p12 = por %p995_p11, %p994_p10 }
 0x11f   : > { %p992_p9 = pneg %p991_p7 }
 0x121   : > { %p997_p13 = pnand %p996_p12, %p992_p9 }
 0x123   : > { %1000 = shalt.err (!%p997_p13)
}
 0x124   : > { %s1054_s29 = smov 128   ;;  %s1055_s6 = smov 8   ;;  %v623_v26 = vmul.f32 0.25, %v607_v30  ;;  %v631_v27 = vmul.f32 0.25, %v615_v31 }
 0x125   : > { %918 = dma.vmem_to_hbm [thread:$0]  (%p1121_p4), %s1364_s5, 2048, %s1362_s7, %s1374_s8, %s1054_s29, %s1054_s29, %s1055_s6  }
 0x126   : > { %639 = vst [vmem:[%s1316_s30 + $0x38] sm:$0xff] %v623_v26  ;;  %647 = vst [vmem:[%s1316_s30 + $0x78] sm:$0xff] %v631_v27 }
 0x127 PF: > { %p924_p0 = scmp.ge.s32.totalorder %s1051_s20, 2  ;;  %s686_s18 = sand.u32 1, %s1031_s15  }
 0x128   : > { %s687_s9 = scalar_lea.sflag [#allocation4], %s686_s18 }
 0x129   : > { %p921_p1 = pnand %p924_p0, %p1128_p8 }
 0x12b   : > { %p922_p2 = pneg %p921_p1 }
 0x12d   : > { %1026 = dma.done.wait (%p922_p2), %s687_s9, 2048  }
 0x12e   : > { %1028 = vsyncadd (%p922_p2), %s687_s9, 4294965248  ;;  %s18_s20 = sadd.s32 1, %s1051_s20   ;;  %s1428_s15 = smov %s1035_s16 }
 0x12f   : > { %p15_p3 = scmp.ge.s32.totalorder %s18_s20, 4   ;;  %s1429_s16 = smov %s1039_s17 }
 0x130   : > { %s1430_s17 = smov %s1134_s28  ;;  %s1431_s18 = smov %s1047_s19 }
 0x131   : > { %s1432_s19 = smov %s1434_s23  ;;  %17 = sbr.rel (!%p15_p3) target bundleno = 4 (0x4), region = 95 }
 0x136   :  { %700 = vsyncpa [#allocation4], 1 }
 0x137   :  { %702 = vsyncpa [#allocation4 + $0x1], 1 }

</bundles_post_ra>
